<compile_context>
chip_gen: v7x
topology: tpu7x:2x2x1
jax: 0.10.0
libtpu: 0.0.40
codegen_flags: <defaults>
</compile_context>

<pallas_src>
import functools

import jax
import jax.numpy as jnp
from jax import lax
from jax.experimental import pallas as pl
from jax.experimental.pallas import tpu as pltpu


def _round_up(x, m):
    return (x + m - 1) // m * m


# ---------------------------------------------------------------------------
# Kernels: tiled (i, j, k) matmul with an f32 VMEM accumulator.
#   k == 0    : acc <- dot (+ bias)
#   k  > 0    : acc += dot
#   k == last : out <- acc (cast)
# ---------------------------------------------------------------------------
def _matmul_kernel(x_ref, w_ref, o_ref, acc_ref):
    k = pl.program_id(2)
    dot = lax.dot_general(
        x_ref[...], w_ref[...],
        dimension_numbers=(((1,), (1,)), ((), ())),   # x @ w.T on the MXU
        preferred_element_type=jnp.float32,
    )

    @pl.when(k == 0)
    def _():
        acc_ref[...] = dot

    @pl.when(k > 0)
    def _():
        acc_ref[...] += dot

    @pl.when(k == pl.num_programs(2) - 1)
    def _():
        o_ref[...] = acc_ref[...].astype(o_ref.dtype)


def _matmul_bias_kernel(x_ref, w_ref, b_ref, o_ref, acc_ref):
    k = pl.program_id(2)
    dot = lax.dot_general(
        x_ref[...], w_ref[...],
        dimension_numbers=(((1,), (1,)), ((), ())),
        preferred_element_type=jnp.float32,
    )

    @pl.when(k == 0)
    def _():
        acc_ref[...] = dot + b_ref[...].astype(jnp.float32)   # bias added once

    @pl.when(k > 0)
    def _():
        acc_ref[...] += dot

    @pl.when(k == pl.num_programs(2) - 1)
    def _():
        o_ref[...] = acc_ref[...].astype(o_ref.dtype)


def make_output_params(input_dim, output_dim, init=1.0, bias=False, dtype=jnp.float32):
    """Deterministic parameter construction mirroring Output.__init__."""
    assert input_dim >= output_dim
    weight = jnp.zeros((output_dim, input_dim), dtype=dtype)
    idx = jnp.arange(output_dim)
    weight = weight.at[idx, idx].set(jnp.asarray(init, dtype=dtype))
    params = {"weight": weight}
    if bias:
        params["bias"] = jnp.zeros((output_dim,), dtype=dtype)
    return params


@functools.partial(jax.jit, static_argnames=("tm", "tn", "tk"))
def _output_forward_pallas(x, weight, bias, *, tm, tn, tk):
    M, K = x.shape
    N = weight.shape[0]
    out_dtype = x.dtype

    # Tile sizes, capped at the hardware-rounded problem size.
    tm_ = min(tm, _round_up(M, 8))      # sublane axis: multiple of 8
    tn_ = min(tn, _round_up(N, 128))    # lane axis: multiple of 128 (dense vst)
    tk_ = min(tk, _round_up(K, 128))

    # Megacore (v7x has 2 TensorCores): keep >= 2 blocks on a "parallel" axis
    # when the problem is big enough to split (harmless elsewhere).
    if pl.cdiv(M, tm_) == 1 and pl.cdiv(N, tn_) == 1:
        if tn_ % 256 == 0 and N > tn_ // 2:
            tn_ //= 2
        elif tm_ % 16 == 0 and M > tm_ // 2:
            tm_ //= 2

    # Only K needs exact handling (garbage K columns would corrupt the whole
    # reduction).  M / N edge tiles are handled by the cdiv grid: out-of-bounds
    # output writes are dropped, so there is no M/N pad and no output slice.
    Kp = _round_up(K, tk_)
    if Kp != K:
        x = jnp.pad(x, ((0, 0), (0, Kp - K)))
        weight = jnp.pad(weight, ((0, 0), (0, Kp - K)))

    grid = (pl.cdiv(M, tm_), pl.cdiv(N, tn_), Kp // tk_)

    x_spec = pl.BlockSpec((tm_, tk_), lambda i, j, k: (i, k))
    w_spec = pl.BlockSpec((tn_, tk_), lambda i, j, k: (j, k))
    o_spec = pl.BlockSpec((tm_, tn_), lambda i, j, k: (i, j))

    itemsize = jnp.dtype(out_dtype).itemsize
    cost = pl.CostEstimate(
        flops=2 * M * N * Kp,
        bytes_accessed=itemsize * (M * Kp * grid[1] + N * Kp * grid[0] + M * N),
        transcendentals=0,
    )
    compiler_params = pltpu.CompilerParams(
        dimension_semantics=("parallel", "parallel", "arbitrary"),
        # > default scoped limits everywhere, safely below v7x's 64 MiB/TC.
        vmem_limit_bytes=48 * 1024 * 1024,
    )
    out_shape = jax.ShapeDtypeStruct((M, N), out_dtype)
    scratch = [pltpu.VMEM((tm_, tn_), jnp.float32)]

    if bias is not None:
        b2d = bias.reshape(1, N)
        b_spec = pl.BlockSpec((1, tn_), lambda i, j, k: (0, j))
        return pl.pallas_call(
            _matmul_bias_kernel,
            out_shape=out_shape,
            grid_spec=pltpu.PrefetchScalarGridSpec(
                num_scalar_prefetch=0,
                grid=grid,
                in_specs=[x_spec, w_spec, b_spec],
                out_specs=o_spec,
                scratch_shapes=scratch,
            ),
            compiler_params=compiler_params,
            cost_estimate=cost,
        )(x, weight, b2d)

    return pl.pallas_call(
        _matmul_kernel,
        out_shape=out_shape,
        grid_spec=pltpu.PrefetchScalarGridSpec(
            num_scalar_prefetch=0,
            grid=grid,
            in_specs=[x_spec, w_spec],
            out_specs=o_spec,
            scratch_shapes=scratch,
        ),
        compiler_params=compiler_params,
        cost_estimate=cost,
    )(x, weight)


def output_forward(x, params, *, tm=512, tn=512, tk=512, force_pallas=False):
    """out = x @ weight.T (+ bias).  x: [M, input_dim] -> [M, output_dim]."""
    weight = params["weight"]
    bias = params.get("bias", None)
    M, K = x.shape
    N = weight.shape[0]
    # Small-problem fast path: sub-tile shapes (like the module defaults) pay
    # pure fixed overhead in a pallas_call; plain XLA is faster there.
    if not force_pallas and (M < 8 or N < 128 or K < 128 or M * N * K < 128 ** 3):
        out = jnp.dot(x, weight.T)
        if bias is not None:
            out = out + bias
        return out
    return _output_forward_pallas(x, weight, bias, tm=tm, tn=tn, tk=tk)


if __name__ == "__main__":
    k0 = jax.random.PRNGKey(0)
    k1, k2, k3, k4 = jax.random.split(k0, 4)

    def snap_bf16(a):
        # Round to bf16-representable f32 values so the checks are insensitive
        # to the MXU's internal precision mode for f32 operands.
        return a.astype(jnp.bfloat16).astype(jnp.float32)

    # --- Test 1: module-default shapes (no bias) -> small-problem fast path.
    M, input_dim, output_dim = 8, 32, 16
    x = jax.random.normal(k1, (M, input_dim), dtype=jnp.float32)
    params = make_output_params(input_dim, output_dim, init=1.0, bias=False)
    out = jax.block_until_ready(output_forward(x, params))
    ref = x @ params["weight"].T
    assert out.shape == (M, output_dim)
    assert jnp.allclose(out, ref, atol=1e-5, rtol=1e-5)

    # --- Test 2: bias path with a scaled partial-identity weight (fast path).
    params_b = make_output_params(input_dim, output_dim, init=2.0, bias=True)
    params_b["bias"] = jax.random.normal(k2, (output_dim,), dtype=jnp.float32)
    out_b = jax.block_until_ready(output_forward(x, params_b))
    ref_b = x @ params_b["weight"].T + params_b["bias"]
    assert jnp.allclose(out_b, ref_b, atol=1e-5, rtol=1e-5)

    # --- Test 3: Pallas path with default (capped) tiles, partial-identity
    # weight; exercises the megacore tile split (grid would otherwise be 1x1).
    M3, K3, N3 = 256, 256, 256
    x3 = snap_bf16(jax.random.normal(k1, (M3, K3), dtype=jnp.float32))
    params3 = make_output_params(K3, N3, init=3.0, bias=False)
    out3 = jax.block_until_ready(output_forward(x3, params3, force_pallas=True))
    ref3 = x3 @ params3["weight"].T
    assert out3.shape == (M3, N3)
    assert jnp.allclose(out3, ref3, atol=1e-4, rtol=1e-4)

    # --- Test 4: Pallas path with multi-step K reduction, bias, dense random
    # weight, and M/N edge blocks (shapes not multiples of the tiles).
    M4, K4, N4 = 200, 384, 150
    x4 = snap_bf16(jax.random.normal(k1, (M4, K4), dtype=jnp.float32))
    w4 = snap_bf16(jax.random.normal(k2, (N4, K4), dtype=jnp.float32) * 0.05)
    b4 = snap_bf16(jax.random.normal(k3, (N4,), dtype=jnp.float32))
    out4 = jax.block_until_ready(
        output_forward(x4, {"weight": w4, "bias": b4},
                       tm=64, tn=128, tk=128, force_pallas=True))
    ref4 = x4 @ w4.T + b4
    assert out4.shape == (M4, N4)
    assert jnp.allclose(out4, ref4, atol=1e-4, rtol=1e-4)

    print("KERNEL_OK")
</pallas_src>

<mosaic_0001>
module attributes {stable_mosaic.version = 11 : i64} {
  func.func @_matmul_kernel(%arg0: i32, %arg1: i32, %arg2: i32, %arg3: memref<256x256xf32, #tpu.memory_space<vmem>>, %arg4: memref<128x256xf32, #tpu.memory_space<vmem>>, %arg5: memref<256x128xf32, #tpu.memory_space<vmem>>, %arg6: memref<256x128xf32, #tpu.memory_space<vmem>>) attributes {dimension_semantics = [#tpu.dimension_semantics<parallel>, #tpu.dimension_semantics<parallel>, #tpu.dimension_semantics<arbitrary>], iteration_bounds = array<i64: 1, 2, 1>, scalar_prefetch = 0 : i64, scratch_operands = 1 : i64, tpu.core_type = #tpu.core_type<tc>, window_params = [{transform_indices = @transform_0, window_bounds = array<i64: 256, 256>}, {transform_indices = @transform_1, window_bounds = array<i64: 128, 256>}, {transform_indices = @transform_2, window_bounds = array<i64: 256, 128>}]} {
    %c0 = arith.constant 0 : index
    %c0_0 = arith.constant 0 : index
    %0 = vector.load %arg3[%c0, %c0_0] : memref<256x256xf32, #tpu.memory_space<vmem>>, vector<256x256xf32>
    %c0_1 = arith.constant 0 : index
    %c0_2 = arith.constant 0 : index
    %1 = vector.load %arg4[%c0_1, %c0_2] : memref<128x256xf32, #tpu.memory_space<vmem>>, vector<128x256xf32>
    %cst = arith.constant dense<0.000000e+00> : vector<256x128xf32>
    %2 = tpu.matmul %0, %1, %cst {dimension_numbers = #tpu.dot_dimension_numbers<[1], [1], [0], [0], [0, 0, 1, 0], [], []>} : vector<256x256xf32>, vector<128x256xf32>, vector<256x128xf32> -> vector<256x128xf32>
    %c0_i32 = arith.constant 0 : i32
    %3 = arith.cmpi eq, %arg2, %c0_i32 : i32
    %4 = arith.extui %3 : i1 to i32
    %c0_i32_3 = arith.constant 0 : i32
    %5 = arith.cmpi ne, %4, %c0_i32_3 : i32
    scf.if %5 {
      %c0_8 = arith.constant 0 : index
      %c0_9 = arith.constant 0 : index
      %12 = vector.load %arg6[%c0_8, %c0_9] : memref<256x128xf32, #tpu.memory_space<vmem>>, vector<256x128xf32>
      tpu.vector_store %arg6[%c0_8, %c0_9], %2 {strides = array<i32>} : memref<256x128xf32, #tpu.memory_space<vmem>>, vector<256x128xf32>,
    } else {
    }
    %c0_i32_4 = arith.constant 0 : i32
    %6 = arith.cmpi sgt, %arg2, %c0_i32_4 : i32
    %7 = arith.extui %6 : i1 to i32
    %c0_i32_5 = arith.constant 0 : i32
    %8 = arith.cmpi ne, %7, %c0_i32_5 : i32
    scf.if %8 {
      %c0_8 = arith.constant 0 : index
      %c0_9 = arith.constant 0 : index
      %12 = vector.load %arg6[%c0_8, %c0_9] : memref<256x128xf32, #tpu.memory_space<vmem>>, vector<256x128xf32>
      %13 = arith.addf %12, %2 : vector<256x128xf32>
      %c0_10 = arith.constant 0 : index
      %c0_11 = arith.constant 0 : index
      %14 = vector.load %arg6[%c0_10, %c0_11] : memref<256x128xf32, #tpu.memory_space<vmem>>, vector<256x128xf32>
      tpu.vector_store %arg6[%c0_10, %c0_11], %13 {strides = array<i32>} : memref<256x128xf32, #tpu.memory_space<vmem>>, vector<256x128xf32>,
    } else {
    }
    %c0_i32_6 = arith.constant 0 : i32
    %9 = arith.cmpi eq, %arg2, %c0_i32_6 : i32
    %10 = arith.extui %9 : i1 to i32
    %c0_i32_7 = arith.constant 0 : i32
    %11 = arith.cmpi ne, %10, %c0_i32_7 : i32
    scf.if %11 {
      %c0_8 = arith.constant 0 : index
      %c0_9 = arith.constant 0 : index
      %12 = vector.load %arg6[%c0_8, %c0_9] : memref<256x128xf32, #tpu.memory_space<vmem>>, vector<256x128xf32>
      %c0_10 = arith.constant 0 : index
      %c0_11 = arith.constant 0 : index
      %13 = vector.load %arg5[%c0_10, %c0_11] : memref<256x128xf32, #tpu.memory_space<vmem>>, vector<256x128xf32>
      tpu.vector_store %arg5[%c0_10, %c0_11], %12 {strides = array<i32>} : memref<256x128xf32, #tpu.memory_space<vmem>>, vector<256x128xf32>,
    } else {
    }
    return
  }
  func.func @transform_0(%arg0: i32, %arg1: i32, %arg2: i32) -> (i32, i32) {
    %c0_i32 = arith.constant 0 : i32
    return %arg0, %arg2 : i32, i32
  }
  func.func @transform_1(%arg0: i32, %arg1: i32, %arg2: i32) -> (i32, i32) {
    %c0_i32 = arith.constant 0 : i32
    return %arg1, %arg2 : i32, i32
  }
  func.func @transform_2(%arg0: i32, %arg1: i32, %arg2: i32) -> (i32, i32) {
    %c0_i32 = arith.constant 0 : i32
    return %arg0, %arg1 : i32, i32
  }
}

</mosaic_0001>

<bundles_post_ra>
// kernel: _output_forward_pallas.1
= control target key start
LH: loop header
LB: loop body
LE: loop exit
PB: predicated region body
PF: predicated region fallthrough
CT: control target
= control target key end

     0   :  { %7 = vsyncpa [#allocation4], 0  ;;  %s1479_s0 = inlined_call_operand.hbm [shape: f32[256,256], index: 0, kind: input, shape index: {}]   ;;  %s1480_s1 = inlined_call_operand.hbm [shape: f32[256,256], index: 1, kind: input, shape index: {}]   ;;  %s1481_s2 = inlined_call_operand.hbm [shape: f32[256,256], index: 2, kind: output, shape index: {}]  }
   0x1   :  { %8 = vsyncpa [#allocation7], 0 }
   0x2   :  { %10 = vsyncpa [#allocation7 + $0x1], 0 }
   0x3   :  { %11 = vsyncpa [#allocation5], 0 }
   0x4   :  { %13 = vsyncpa [#allocation5 + $0x1], 0  ;;  %s1181_s9 = smov 0   ;;  %s1183_s10 = smov 0  }
   0x5   :  { %s1185_s11 = smov 0   ;;  %s1187_s12 = smov 0  }
   0x6   :  { %s1189_s13 = smov 0   ;;  %s1191_s14 = smov 0  }
   0x7 LB: > { %s867_s15 = sadd.s32 4294967295, %s1156_s14   ;;  %s868_s16 = sadd.s32 4294967294, %s1156_s14   ;;  %s1156_s14 = sphi %s1191_s14, %s19_s14   ;;  %s1152_s13 = sphi %s1189_s13, %s1505_s13   ;;  %s1148_s12 = sphi %s1187_s12, %s1504_s12   ;;  %s1144_s11 = sphi %s1185_s11, %s1503_s11   ;;  %s1140_s10 = sphi %s1183_s10, %s1502_s10   ;;  %s1136_s9 = sphi %s1181_s9, %s1501_s9  }
   0x8   : > { %p88_p0 = scmp.ne.s32.totalorder %s1140_s10, %s1136_s9  ;;  %p1215_p1 = scmp.eq.s32.totalorder %s867_s15, 0 }
   0x9   : > { %p1219_p2 = scmp.eq.s32.totalorder %s867_s15, 1  ;;  %p120_p3 = scmp.eq.s32.totalorder %s868_s16, 1 }
   0xa   : > { %s1486_s17 = scalar_select %p1215_p1, 1, 0 }
   0xb   : > { %s1487_s18 = scalar_select %p1219_p2, 1, 0 }
   0xc   : > { %p1225_p4 = por %p1215_p1, %p88_p0  ;;  %p869_p5 = scmp.ge.s32.totalorder %s1156_s14, 1 }
   0xd   : > { %p1230_p6 = por %p120_p3, %p88_p0  ;;  %p127_p7 = scmp.lt.s32.totalorder %s1156_s14, 3 }
   0xe   : > { %s1488_s19 = scalar_select %p1225_p4, 1, 0 }
   0xf   : > { %s1489_s20 = scalar_select %p1230_p6, 1, 0 }
  0x10   : > { %p1235_p8 = pnand %p869_p5, %p127_p7  ;;  %s1158_s22 = smov [#allocation3]  }
  0x11   : > { %s145_s23 = sshll.u32 %s1158_s22, 4  ;;  %s34_s25 = sadd.s32 1, %s1152_s13  ;;  %s146_s23 = int_to_ptr.vmem [resolvable:$true] %s145_s23 }
  0x12   : > { %s1490_s21 = scalar_select %p1235_p8, 1, 0 }
  0x13   : > { %p942_p9 = pneg %p1235_p8  ;;  %s1012_s28 = scalar_lea.hbm %s1479_s0, 8192 }
  0x14   : > { %p1013_p12 = scmp.ne.s32.totalorder %s1479_s0, %s1012_s28  ;;  %p1019_p5 = scmp.lt.u32.totalorder %s1012_s28, %s1479_s0 }
  0x15   : > { %p1244_p11 = pnand %p942_p9, %p1215_p1 }
  0x17   : > { %p1014_p13 = pneg %p1244_p11 }
  0x19   : > { %p1015_p0 = pnand %p1014_p13, %p1013_p12 }
  0x1b   : > { %p1016_p3 = pneg %p1015_p0 }
  0x1d   : > { %p1021_p7 = pnand %p1019_p5, %p1016_p3 }
  0x1f   : > { %1024 = shalt.err (!%p1021_p7)
}
  0x20   : > { %s1025_s5 = scalar_lea.vmem %s146_s23, 8192  ;;  %p1033_p4 = scmp.lt.s32.totalorder %s146_s23, %s146_s23 }
  0x21   : > { %p1026_p9 = scmp.ne.s32.totalorder %s146_s23, %s1025_s5  ;;  %p1034_p1 = scmp.lt.s32.totalorder %s1025_s5, %s1025_s5 }
  0x23   : > { %p1028_p10 = pnand %p1026_p9, %p1014_p13  ;;  %p1035_p8 = por %p1034_p1, %p1033_p4 }
  0x25   : > { %p1029_p6 = pneg %p1028_p10 }
  0x27   : > { %p1036_p2 = pnand %p1035_p8, %p1029_p6 }
  0x29   : > { %1039 = shalt.err (!%p1036_p2)
}
  0x2a   : > { %s1159_s6 = smov 256   ;;  %s1160_s7 = smov 16  }
  0x2b   : > { %945 = dma.hbm_to_vmem [thread:$0]  (!%p1244_p11), %s1479_s0, 8192, %s146_s23, [#allocation4], %s1159_s6, %s1159_s6, %s1160_s7  }
  0x2c   : > { %p36_p1 = scmp.ge.s32.totalorder %s34_s25, 2  ;;  %s75_s16 = sadd.s32 1, %s1144_s11 }
  0x2d   : > { %p82_p2 = scmp.ne.s32.totalorder %s1144_s11, %s1140_s10  ;;  %p83_p4 = scmp.eq.s32.totalorder %s1156_s14, 0 }
  0x2e   : > { %s1507_s25 = smov (%p36_p1, %s34_s25), 0  ;;  %p1493_p8 = scmp.ne.s32.totalorder %s1487_s18, 0 }
  0x2f   : > { %p1274_p6 = por %p83_p4, %p82_p2  ;;  %s70_s26 = ssub.s32 %s1152_s13, %s1507_s25 }
  0x30   : > { %p1280_p10 = por %p1493_p8, %p82_p2  ;;  %p955_p12 = scmp.lt.s32.totalorder %s1156_s14, 2 }
  0x31   : > { %p73_p11 = scmp.eq.s32.totalorder %s70_s26, 0  ;;  %s159_s23 = sand.u32 1, %s1144_s11  }
  0x32   : > { %s872_s27 = sshll.u32 %s159_s23, 8  ;;  %s885_s29 = sshll.u32 %s1152_s13, 12 }
  0x33   : > { %s1289_s28 = scalar_select %p73_p11, %s1144_s11, %s75_s16  }
  0x34   : > { %s1295_s4 = scalar_lea.hbm %s1480_s1, %s885_s29  ;;  %s163_s18 = scalar_lea.vmem [#allocation6], %s872_s27 }
  0x35   : > { %s173_s5 = sshll.u32 %s163_s18, 4  ;;  %p1301_p13 = pnand %p955_p12, %p1274_p6  ;;  %s1297_s5 = int_to_ptr.vmem [resolvable:$true] %s173_s5 }
  0x36   : > { %s1305_s15 = scalar_lea.sflag [#allocation7], %s159_s23  ;;  %s1040_s16 = scalar_lea.hbm %s1295_s4, 4096 }
  0x37   : > { %p1041_p0 = scmp.ne.s32.totalorder %s1295_s4, %s1040_s16  ;;  %p1042_p3 = pneg %p1301_p13 }
  0x38   : > { %s1045_s22 = scalar_lea.hbm %s1480_s1, 8192  ;;  %p1046_p9 = scmp.lt.u32.totalorder %s1295_s4, %s1480_s1 }
  0x39   : > { %p1043_p5 = pnand %p1042_p3, %p1041_p0  ;;  %p1047_p1 = scmp.lt.u32.totalorder %s1045_s22, %s1040_s16 }
  0x3a   : > { %p1049_p4 = scmp.lt.u32.totalorder %s1040_s16, %s1295_s4 }
  0x3b   : > { %p1044_p7 = pneg %p1043_p5  ;;  %p1048_p2 = por %p1047_p1, %p1046_p9 }
  0x3d   : > { %p1050_p6 = por %p1049_p4, %p1048_p2 }
  0x3f   : > { %p1051_p8 = pnand %p1050_p6, %p1044_p7 }
  0x41   : > { %1054 = shalt.err (!%p1051_p8)
}
  0x42   : > { %s1055_s23 = scalar_lea.vmem %s1297_s5, 4096  ;;  %s1161_s3 = smov [#allocation6]  }
  0x43   : > { %p1056_p12 = scmp.ne.s32.totalorder %s1297_s5, %s1055_s23  ;;  %s1060_s18 = sshll.u32 %s1161_s3, 4  ;;  %s1061_s18 = int_to_ptr.vmem [resolvable:$false] %s1060_s18 }
  0x44   : > { %s1062_s26 = scalar_lea.vmem %s1061_s18, 8192  ;;  %p1063_p5 = scmp.lt.s32.totalorder %s1297_s5, %s1061_s18 }
  0x45   : > { %p1058_p11 = pnand %p1056_p12, %p1042_p3  ;;  %p1064_p9 = scmp.lt.s32.totalorder %s1062_s26, %s1055_s23 }
  0x47   : > { %p1059_p0 = pneg %p1058_p11  ;;  %p1065_p1 = por %p1064_p9, %p1063_p5 }
  0x49   : > { %p1066_p2 = pnand %p1065_p1, %p1059_p0 }
  0x4b   : > { %1069 = shalt.err (!%p1066_p2)
}
  0x4c   : > { %949 = dma.hbm_to_vmem [thread:$0]  (!%p1301_p13), %s1295_s4, 4096, %s1297_s5, %s1305_s15, %s1159_s6, %s1159_s6, %s1160_s7  }
  0x4d   : > { %p1496_p3 = scmp.ne.s32.totalorder %s1490_s21, 0 }
  0x4e   : > { %p1497_p7 = scmp.ne.s32.totalorder (!%p1496_p3), %s1486_s17, 0 }
  0x4f   : > { %185 = sbr.rel (%p1496_p3) target bundleno = 446 (0x1be), region = 28 }
  0x56   : > { %1123 = dma.done.wait (%p1497_p7), [#allocation4], 8192  }
  0x57   : > { %1125 = vsyncadd (%p1497_p7), [#allocation4], 4294959104  ;;  %s1343_s16 = sand.u32 1, %s1140_s10   ;;  %p1498_p13 = scmp.ne.s32.totalorder %s1488_s19, 0 }
  0x58   : > { %s878_s8 = sshll.u32 %s1343_s16, 8  ;;  %s192_s27 = scalar_lea.sflag [#allocation7], %s1343_s16 }
  0x59   : > { %s1349_s6 = scalar_lea.vmem [#allocation6], %s878_s8 }
  0x5a   : > { %1127 = dma.done.wait (%p1498_p13), %s192_s27, 4096  }
  0x5b   : > { %1129 = vsyncadd (%p1498_p13), %s192_s27, 4294963200  ;;  %v286_v0 = vld [vmem:[%s1349_s6 + $0x8] sm:$0xff]  ;;  %v288_v1 = vld [vmem:[%s1349_s6 + $0x18] sm:$0xff]  ;;  %s1389_s17 = scalar_lea.vmem [#allocation8], %s878_s8  ;;  %s881_s19 = sshll.u32 %s1148_s12, 7 }
  0x5c   : > { %v285_v2 = vld [vmem:[%s1349_s6] sm:$0xff]  ;;  %v886_v3 = vpack.c.bf16 %v288_v1, %v286_v0  ;;  %v287_v4 = vld [vmem:[%s1349_s6 + $0x10] sm:$0xff]  ;;  %v290_v5 = vld [vmem:[%s1349_s6 + $0x28] sm:$0xff]  ;;  %s761_s21 = sshll.u32 %s1389_s17, 4  ;;  %s1426_s5 = scalar_lea.hbm %s1481_s2, %s881_s19  ;;  %s1428_s21 = int_to_ptr.vmem [resolvable:$true] %s761_s21 }
  0x5d   : > { %v292_v6 = vld [vmem:[%s1349_s6 + $0x38] sm:$0xff]  ;;  %v888_v7 = vpack.c.bf16 %v287_v4, %v285_v2  ;;  %v289_v9 = vld [vmem:[%s1349_s6 + $0x20] sm:$0xff]  ;;  %v291_v10 = vld [vmem:[%s1349_s6 + $0x30] sm:$0xff]  ;;  %s746_s12 = scalar_lea.sflag [#allocation5], %s1343_s16  ;;  %s1070_s15 = scalar_lea.vmem %s1428_s21, 4096 }
  0x5e   : > { %v890_v8 = vpack.c.bf16 %v292_v6, %v290_v5  ;;  %887 = vmatprep.subr.bf16.mxu0 %v886_v3  ;;  %918 = vmatprep.subr.bf16.mxu1 %v886_v3  ;;  %v294_v11 = vld [vmem:[%s1349_s6 + $0x48] sm:$0xff]  ;;  %v296_v12 = vld [vmem:[%s1349_s6 + $0x58] sm:$0xff]  ;;  %v892_v13 = vpack.c.bf16 %v291_v10, %v289_v9  ;;  %v293_v17 = vld [vmem:[%s1349_s6 + $0x40] sm:$0xff]  ;;  %p1071_p4 = scmp.ne.s32.totalorder %s1428_s21, %s1070_s15  ;;  %s1162_s22 = smov [#allocation8]  }
  0x5f   : > { %889 = vmatpush1.bf16.xpose.msra.mxu0 %v888_v7  ;;  %926 = vmatpush1.bf16.xpose.msra.mxu1 %v888_v7  ;;  %v894_v14 = vpack.c.bf16 %v296_v12, %v294_v11  ;;  %v222_v15 = vld [vmem:[#allocation3 + $0x8] sm:$0xff]  ;;  %v295_v18 = vld [vmem:[%s1349_s6 + $0x50] sm:$0xff]  ;;  %v300_v20 = vld [vmem:[%s1349_s6 + $0x78] sm:$0xff]  ;;  %s1074_s29 = sshll.u32 %s1162_s22, 4  ;;  %s1075_s29 = int_to_ptr.vmem [resolvable:$false] %s1074_s29 }
  0x60   : > { %891 = vmatprep.subr.bf16.mxu0 %v890_v8  ;;  %919 = vmatprep.subr.bf16.mxu1 %v890_v8  ;;  %v254_v16 = vld [vmem:[#allocation3 + $0x108] sm:$0xff]  ;;  %v896_v21 = vpack.c.bf16 %v295_v18, %v293_v17  ;;  %v297_v23 = vld [vmem:[%s1349_s6 + $0x60] sm:$0xff]  ;;  %v299_v24 = vld [vmem:[%s1349_s6 + $0x70] sm:$0xff]  ;;  %p1072_p6 = pnand %p1071_p4, %p1280_p10  ;;  %s1076_s30 = scalar_lea.vmem %s1075_s29, 8192 }
  0x61   : > { %381 = vmatprep.mubr.f32.mxu0 %v222_v15  ;;  %v298_v19 = vld [vmem:[%s1349_s6 + $0x68] sm:$0xff]  ;;  %461 = vmatprep.mubr.f32.mxu1 %v254_v16  ;;  %v304_v26 = vld [vmem:[%s1349_s6 + $0x98] sm:$0xff]  ;;  %v900_v27 = vpack.c.bf16 %v299_v24, %v297_v23  ;;  %v301_v29 = vld [vmem:[%s1349_s6 + $0x80] sm:$0xff]  ;;  %p1077_p12 = scmp.lt.s32.totalorder %s1428_s21, %s1075_s29  ;;  %p1078_p11 = scmp.lt.s32.totalorder %s1076_s30, %s1070_s15 }
  0x62   : > { %v898_v22 = vpack.c.bf16 %v300_v20, %v298_v19  ;;  %v302_v25 = vld [vmem:[%s1349_s6 + $0x88] sm:$0xff]  ;;  %v303_v30 = vld [vmem:[%s1349_s6 + $0x90] sm:$0xff]  ;;  %v308_v32 = vld [vmem:[%s1349_s6 + $0xb8] sm:$0xff]  ;;  %p1073_p8 = pneg %p1072_p6 }
  0x63   : > { %v902_v28 = vpack.c.bf16 %v304_v26, %v302_v25  ;;  %v306_v31 = vld [vmem:[%s1349_s6 + $0xa8] sm:$0xff]  ;;  %v904_v33 = vpack.c.bf16 %v303_v30, %v301_v29  ;;  %v305_v35 = vld [vmem:[%s1349_s6 + $0xa0] sm:$0xff]  ;;  %v307_v36 = vld [vmem:[%s1349_s6 + $0xb0] sm:$0xff]  ;;  %p1079_p0 = por %p1078_p11, %p1077_p12 }
  0x64   : > { %v906_v34 = vpack.c.bf16 %v308_v32, %v306_v31  ;;  %v310_v37 = vld [vmem:[%s1349_s6 + $0xc8] sm:$0xff]  ;;  %v312_v38 = vld [vmem:[%s1349_s6 + $0xd8] sm:$0xff]  ;;  %v908_v39 = vpack.c.bf16 %v307_v36, %v305_v35  ;;  %v309_v41 = vld [vmem:[%s1349_s6 + $0xc0] sm:$0xff] }
  0x65   : > { %v910_v40 = vpack.c.bf16 %v312_v38, %v310_v37  ;;  %v311_v42 = vld [vmem:[%s1349_s6 + $0xd0] sm:$0xff]  ;;  %v314_v43 = vld [vmem:[%s1349_s6 + $0xe8] sm:$0xff]  ;;  %v316_v44 = vld [vmem:[%s1349_s6 + $0xf8] sm:$0xff]  ;;  %p1080_p5 = pnand %p1079_p0, %p1073_p8 }
  0x66   : > { %v912_v45 = vpack.c.bf16 %v311_v42, %v309_v41  ;;  %v914_v46 = vpack.c.bf16 %v316_v44, %v314_v43  ;;  %v313_v47 = vld [vmem:[%s1349_s6 + $0xe0] sm:$0xff]  ;;  %v315_v48 = vld [vmem:[%s1349_s6 + $0xf0] sm:$0xff]  ;;  %v224_v52 = vld [vmem:[#allocation3 + $0x18] sm:$0xff] }
  0x67   : > { %893 = vmatpush1.bf16.xpose.msra.mxu0 %v892_v13  ;;  %927 = vmatpush1.bf16.xpose.msra.mxu1 %v892_v13  ;;  %v916_v49 = vpack.c.bf16 %v315_v48, %v313_v47  ;;  %v221_v50 = vld [vmem:[#allocation3] sm:$0xff]  ;;  %v256_v53 = vld [vmem:[#allocation3 + $0x118] sm:$0xff]  ;;  %v223_v54 = vld [vmem:[#allocation3 + $0x10] sm:$0xff] }
  0x68   : > { %895 = vmatprep.subr.bf16.mxu0 %v894_v14  ;;  %920 = vmatprep.subr.bf16.mxu1 %v894_v14  ;;  %v253_v51 = vld [vmem:[#allocation3 + $0x100] sm:$0xff]  ;;  %v255_v55 = vld [vmem:[#allocation3 + $0x110] sm:$0xff]  ;;  %v226_v56 = vld [vmem:[#allocation3 + $0x28] sm:$0xff] }
  0x69   : > { %v258_v57 = vld [vmem:[#allocation3 + $0x128] sm:$0xff]  ;;  %v225_v58 = vld [vmem:[#allocation3 + $0x20] sm:$0xff]  ;;  %v228_v60 = vld [vmem:[#allocation3 + $0x38] sm:$0xff] }
  0x6a   : > { %v257_v59 = vld [vmem:[#allocation3 + $0x120] sm:$0xff]  ;;  %v260_v61 = vld [vmem:[#allocation3 + $0x138] sm:$0xff]  ;;  %v227_v62 = vld [vmem:[#allocation3 + $0x30] sm:$0xff] }
  0x6b   : > { %v259_v63 = vld [vmem:[#allocation3 + $0x130] sm:$0xff]  ;;  %v230_v0 = vld [vmem:[#allocation3 + $0x48] sm:$0xff]  ;;  %v229_v2 = vld [vmem:[#allocation3 + $0x40] sm:$0xff] }
  0x6c   : > { %v262_v1 = vld [vmem:[#allocation3 + $0x148] sm:$0xff]  ;;  %v261_v3 = vld [vmem:[#allocation3 + $0x140] sm:$0xff]  ;;  %v232_v4 = vld [vmem:[#allocation3 + $0x58] sm:$0xff] }
  0x6d   : > { %v264_v5 = vld [vmem:[#allocation3 + $0x158] sm:$0xff]  ;;  %v231_v6 = vld [vmem:[#allocation3 + $0x50] sm:$0xff]  ;;  %v234_v8 = vld [vmem:[#allocation3 + $0x68] sm:$0xff] }
  0x6e   : > { %v263_v7 = vld [vmem:[#allocation3 + $0x150] sm:$0xff]  ;;  %v266_v9 = vld [vmem:[#allocation3 + $0x168] sm:$0xff]  ;;  %v233_v10 = vld [vmem:[#allocation3 + $0x60] sm:$0xff] }
  0x6f   : > { %897 = vmatpush1.bf16.xpose.msra.mxu0 %v896_v21  ;;  %928 = vmatpush1.bf16.xpose.msra.mxu1 %v896_v21  ;;  %v265_v11 = vld [vmem:[#allocation3 + $0x160] sm:$0xff]  ;;  %v236_v12 = vld [vmem:[#allocation3 + $0x78] sm:$0xff]  ;;  %v235_v14 = vld [vmem:[#allocation3 + $0x70] sm:$0xff] }
  0x70   : > { %899 = vmatprep.subr.bf16.mxu0 %v898_v22  ;;  %921 = vmatprep.subr.bf16.mxu1 %v898_v22  ;;  %v268_v13 = vld [vmem:[#allocation3 + $0x178] sm:$0xff]  ;;  %v267_v15 = vld [vmem:[#allocation3 + $0x170] sm:$0xff]  ;;  %v238_v16 = vld [vmem:[#allocation3 + $0x88] sm:$0xff] }
  0x71   : > { %v270_v17 = vld [vmem:[#allocation3 + $0x188] sm:$0xff]  ;;  %v237_v18 = vld [vmem:[#allocation3 + $0x80] sm:$0xff]  ;;  %v240_v20 = vld [vmem:[#allocation3 + $0x98] sm:$0xff] }
  0x72   : > { %v269_v19 = vld [vmem:[#allocation3 + $0x180] sm:$0xff]  ;;  %v272_v21 = vld [vmem:[#allocation3 + $0x198] sm:$0xff]  ;;  %v239_v22 = vld [vmem:[#allocation3 + $0x90] sm:$0xff] }
  0x73   : > { %v271_v23 = vld [vmem:[#allocation3 + $0x190] sm:$0xff]  ;;  %v242_v24 = vld [vmem:[#allocation3 + $0xa8] sm:$0xff]  ;;  %v241_v26 = vld [vmem:[#allocation3 + $0xa0] sm:$0xff] }
  0x74   : > { %v274_v25 = vld [vmem:[#allocation3 + $0x1a8] sm:$0xff]  ;;  %v276_v29 = vld [vmem:[#allocation3 + $0x1b8] sm:$0xff]  ;;  %v243_v30 = vld [vmem:[#allocation3 + $0xb0] sm:$0xff] }
  0x75   : > { %v275_v31 = vld [vmem:[#allocation3 + $0x1b0] sm:$0xff]  ;;  %v246_v32 = vld [vmem:[#allocation3 + $0xc8] sm:$0xff]  ;;  %v277_v35 = vld [vmem:[#allocation3 + $0x1c0] sm:$0xff] }
  0x76   : > { %v248_v36 = vld [vmem:[#allocation3 + $0xd8] sm:$0xff]  ;;  %v247_v38 = vld [vmem:[#allocation3 + $0xd0] sm:$0xff]  ;;  %v282_v41 = vld [vmem:[#allocation3 + $0x1e8] sm:$0xff] }
  0x77   : > { %901 = vmatpush1.bf16.xpose.msra.mxu0 %v900_v27  ;;  %929 = vmatpush1.bf16.xpose.msra.mxu1 %v900_v27  ;;  %v273_v27 = vld [vmem:[#allocation3 + $0x1a0] sm:$0xff]  ;;  %v280_v37 = vld [vmem:[#allocation3 + $0x1d8] sm:$0xff]  ;;  %v283_v47 = vld [vmem:[#allocation3 + $0x1f0] sm:$0xff] }
  0x78   : > { %903 = vmatprep.subr.bf16.mxu0 %v902_v28  ;;  %922 = vmatprep.subr.bf16.mxu1 %v902_v28  ;;  %v244_v28 = vld [vmem:[#allocation3 + $0xb8] sm:$0xff]  ;;  %v249_v42 = vld [vmem:[#allocation3 + $0xe0] sm:$0xff] }
  0x79   : > { %v281_v43 = vld [vmem:[#allocation3 + $0x1e0] sm:$0xff]  ;;  %v252_v44 = vld [vmem:[#allocation3 + $0xf8] sm:$0xff] }
  0x7f   : > { %905 = vmatpush1.bf16.xpose.msra.mxu0 %v904_v33  ;;  %930 = vmatpush1.bf16.xpose.msra.mxu1 %v904_v33  ;;  %v278_v33 = vld [vmem:[#allocation3 + $0x1c8] sm:$0xff] }
  0x80   : > { %907 = vmatprep.subr.bf16.mxu0 %v906_v34  ;;  %923 = vmatprep.subr.bf16.mxu1 %v906_v34  ;;  %v245_v34 = vld [vmem:[#allocation3 + $0xc0] sm:$0xff] }
  0x87   : > { %909 = vmatpush1.bf16.xpose.msra.mxu0 %v908_v39  ;;  %931 = vmatpush1.bf16.xpose.msra.mxu1 %v908_v39  ;;  %v279_v39 = vld [vmem:[#allocation3 + $0x1d0] sm:$0xff] }
  0x88   : > { %911 = vmatprep.subr.bf16.mxu0 %v910_v40  ;;  %924 = vmatprep.subr.bf16.mxu1 %v910_v40  ;;  %v250_v40 = vld [vmem:[#allocation3 + $0xe8] sm:$0xff] }
  0x8f   : > { %913 = vmatpush1.bf16.xpose.msra.mxu0 %v912_v45  ;;  %932 = vmatpush1.bf16.xpose.msra.mxu1 %v912_v45  ;;  %v284_v45 = vld [vmem:[#allocation3 + $0x1f8] sm:$0xff] }
  0x90   : > { %915 = vmatprep.subr.bf16.mxu0 %v914_v46  ;;  %925 = vmatprep.subr.bf16.mxu1 %v914_v46  ;;  %v251_v46 = vld [vmem:[#allocation3 + $0xf0] sm:$0xff] }
  0x97   : > { %917 = vmatpush1.bf16.xpose.msra.mxu0 %v916_v49  ;;  %933 = vmatpush1.bf16.xpose.msra.mxu1 %v916_v49 }
  0x9e   : > { %382 = vmatmul.mubr.f32.vlgmr.msra.gmra.mrb[0].mxu0 %v221_v50  ;;  %462 = vmatmul.mubr.f32.vlgmr.msra.gmra.mrb[0].mxu1 %v253_v51 }
  0x9f   : > { %386 = vmatprep.mubr.f32.mxu0 %v224_v52  ;;  %466 = vmatprep.mubr.f32.mxu1 %v256_v53 }
  0xa2   : > { %387 = vmatmul.mubr.f32.gmra.mrb[2].mxu0 %v223_v54  ;;  %467 = vmatmul.mubr.f32.gmra.mrb[2].mxu1 %v255_v55 }
  0xa3   : > { %391 = vmatprep.mubr.f32.mxu0 %v226_v56  ;;  %471 = vmatprep.mubr.f32.mxu1 %v258_v57 }
  0xa6   : > { %392 = vmatmul.mubr.f32.gmra.mrb[4].mxu0 %v225_v58  ;;  %472 = vmatmul.mubr.f32.gmra.mrb[4].mxu1 %v257_v59 }
  0xa7   : > { %396 = vmatprep.mubr.f32.mxu0 %v228_v60  ;;  %476 = vmatprep.mubr.f32.mxu1 %v260_v61 }
  0xaa   : > { %397 = vmatmul.mubr.f32.gmra.mrb[6].mxu0 %v227_v62  ;;  %477 = vmatmul.mubr.f32.gmra.mrb[6].mxu1 %v259_v63 }
  0xab   : > { %401 = vmatprep.mubr.f32.mxu0 %v230_v0  ;;  %481 = vmatprep.mubr.f32.mxu1 %v262_v1 }
  0xae   : > { %402 = vmatmul.mubr.f32.gmra.mrb[8].mxu0 %v229_v2  ;;  %482 = vmatmul.mubr.f32.gmra.mrb[8].mxu1 %v261_v3 }
  0xaf   : > { %406 = vmatprep.mubr.f32.mxu0 %v232_v4  ;;  %486 = vmatprep.mubr.f32.mxu1 %v264_v5 }
  0xb2   : > { %407 = vmatmul.mubr.f32.gmra.mrb[10].mxu0 %v231_v6  ;;  %487 = vmatmul.mubr.f32.gmra.mrb[10].mxu1 %v263_v7 }
  0xb3   : > { %411 = vmatprep.mubr.f32.mxu0 %v234_v8  ;;  %491 = vmatprep.mubr.f32.mxu1 %v266_v9 }
  0xb6   : > { %412 = vmatmul.mubr.f32.gmra.mrb[12].mxu0 %v233_v10  ;;  %492 = vmatmul.mubr.f32.gmra.mrb[12].mxu1 %v265_v11 }
  0xb7   : > { %416 = vmatprep.mubr.f32.mxu0 %v236_v12  ;;  %496 = vmatprep.mubr.f32.mxu1 %v268_v13 }
  0xba   : > { %417 = vmatmul.mubr.f32.gmra.mrb[14].mxu0 %v235_v14  ;;  %497 = vmatmul.mubr.f32.gmra.mrb[14].mxu1 %v267_v15 }
  0xbb   : > { %421 = vmatprep.mubr.f32.mxu0 %v238_v16  ;;  %501 = vmatprep.mubr.f32.mxu1 %v270_v17 }
  0xbe   : > { %422 = vmatmul.mubr.f32.gmra.mrb[16].mxu0 %v237_v18  ;;  %502 = vmatmul.mubr.f32.gmra.mrb[16].mxu1 %v269_v19 }
  0xbf   : > { %426 = vmatprep.mubr.f32.mxu0 %v240_v20  ;;  %506 = vmatprep.mubr.f32.mxu1 %v272_v21 }
  0xc2   : > { %427 = vmatmul.mubr.f32.gmra.mrb[18].mxu0 %v239_v22  ;;  %507 = vmatmul.mubr.f32.gmra.mrb[18].mxu1 %v271_v23 }
  0xc3   : > { %431 = vmatprep.mubr.f32.mxu0 %v242_v24  ;;  %511 = vmatprep.mubr.f32.mxu1 %v274_v25 }
  0xc6   : > { %432 = vmatmul.mubr.f32.gmra.mrb[20].mxu0 %v241_v26  ;;  %512 = vmatmul.mubr.f32.gmra.mrb[20].mxu1 %v273_v27 }
  0xc7   : > { %436 = vmatprep.mubr.f32.mxu0 %v244_v28  ;;  %516 = vmatprep.mubr.f32.mxu1 %v276_v29 }
  0xca   : > { %437 = vmatmul.mubr.f32.gmra.mrb[22].mxu0 %v243_v30  ;;  %517 = vmatmul.mubr.f32.gmra.mrb[22].mxu1 %v275_v31 }
  0xcb   : > { %441 = vmatprep.mubr.f32.mxu0 %v246_v32  ;;  %521 = vmatprep.mubr.f32.mxu1 %v278_v33 }
  0xce   : > { %442 = vmatmul.mubr.f32.gmra.mrb[24].mxu0 %v245_v34  ;;  %522 = vmatmul.mubr.f32.gmra.mrb[24].mxu1 %v277_v35 }
  0xcf   : > { %446 = vmatprep.mubr.f32.mxu0 %v248_v36  ;;  %526 = vmatprep.mubr.f32.mxu1 %v280_v37 }
  0xd2   : > { %447 = vmatmul.mubr.f32.gmra.mrb[26].mxu0 %v247_v38  ;;  %527 = vmatmul.mubr.f32.gmra.mrb[26].mxu1 %v279_v39 }
  0xd3   : > { %451 = vmatprep.mubr.f32.mxu0 %v250_v40  ;;  %531 = vmatprep.mubr.f32.mxu1 %v282_v41 }
  0xd6   : > { %452 = vmatmul.mubr.f32.gmra.mrb[28].mxu0 %v249_v42  ;;  %532 = vmatmul.mubr.f32.gmra.mrb[28].mxu1 %v281_v43 }
  0xd7   : > { %456 = vmatprep.mubr.f32.mxu0 %v252_v44  ;;  %536 = vmatprep.mubr.f32.mxu1 %v284_v45 }
  0xda   : > { %457 = vmatmul.mubr.f32.gmra.mrb[30].mxu0 %v251_v46  ;;  %537 = vmatmul.mubr.f32.gmra.mrb[30].mxu1 %v283_v47 }
 0x171   : > { %v383_v48 = vpop.f32.mrb[0].mxu0  ;;  %v463_v49 = vpop.f32.mrb[0].mxu1 }
 0x172   : > { %713 = vst [vmem:[%s1389_s17] sm:$0xff] %v383_v48  ;;  %729 = vst [vmem:[%s1389_s17 + $0x80] sm:$0xff] %v463_v49  ;;  %v385_v50 = vpop.f32.mrb[1].mxu0  ;;  %v465_v51 = vpop.f32.mrb[1].mxu1 }
 0x175   : > { %v388_v52 = vpop.f32.mrb[2].mxu0  ;;  %v468_v53 = vpop.f32.mrb[2].mxu1 }
 0x176   : > { %714 = vst [vmem:[%s1389_s17 + $0x8] sm:$0xff] %v388_v52  ;;  %730 = vst [vmem:[%s1389_s17 + $0x88] sm:$0xff] %v468_v53  ;;  %v390_v54 = vpop.f32.mrb[3].mxu0  ;;  %v470_v55 = vpop.f32.mrb[3].mxu1 }
 0x179   : > { %v393_v56 = vpop.f32.mrb[4].mxu0  ;;  %v473_v57 = vpop.f32.mrb[4].mxu1 }
 0x17a   : > { %715 = vst [vmem:[%s1389_s17 + $0x10] sm:$0xff] %v393_v56  ;;  %731 = vst [vmem:[%s1389_s17 + $0x90] sm:$0xff] %v473_v57  ;;  %v395_v58 = vpop.f32.mrb[5].mxu0  ;;  %v475_v59 = vpop.f32.mrb[5].mxu1 }
 0x17d   : > { %v398_v60 = vpop.f32.mrb[6].mxu0  ;;  %v478_v61 = vpop.f32.mrb[6].mxu1 }
 0x17e   : > { %716 = vst [vmem:[%s1389_s17 + $0x18] sm:$0xff] %v398_v60  ;;  %732 = vst [vmem:[%s1389_s17 + $0x98] sm:$0xff] %v478_v61  ;;  %v400_v62 = vpop.f32.mrb[7].mxu0  ;;  %v480_v63 = vpop.f32.mrb[7].mxu1 }
 0x181   : > { %v403_v0 = vpop.f32.mrb[8].mxu0  ;;  %v483_v1 = vpop.f32.mrb[8].mxu1 }
 0x182   : > { %717 = vst [vmem:[%s1389_s17 + $0x20] sm:$0xff] %v403_v0  ;;  %733 = vst [vmem:[%s1389_s17 + $0xa0] sm:$0xff] %v483_v1  ;;  %v405_v2 = vpop.f32.mrb[9].mxu0  ;;  %v485_v3 = vpop.f32.mrb[9].mxu1 }
 0x185   : > { %v408_v4 = vpop.f32.mrb[10].mxu0  ;;  %v488_v5 = vpop.f32.mrb[10].mxu1 }
 0x186   : > { %718 = vst [vmem:[%s1389_s17 + $0x28] sm:$0xff] %v408_v4  ;;  %734 = vst [vmem:[%s1389_s17 + $0xa8] sm:$0xff] %v488_v5  ;;  %v410_v6 = vpop.f32.mrb[11].mxu0  ;;  %v490_v7 = vpop.f32.mrb[11].mxu1 }
 0x189   : > { %v413_v8 = vpop.f32.mrb[12].mxu0  ;;  %v493_v9 = vpop.f32.mrb[12].mxu1 }
 0x18a   : > { %719 = vst [vmem:[%s1389_s17 + $0x30] sm:$0xff] %v413_v8  ;;  %735 = vst [vmem:[%s1389_s17 + $0xb0] sm:$0xff] %v493_v9  ;;  %v415_v10 = vpop.f32.mrb[13].mxu0  ;;  %v495_v11 = vpop.f32.mrb[13].mxu1 }
 0x18d   : > { %v418_v12 = vpop.f32.mrb[14].mxu0  ;;  %v498_v13 = vpop.f32.mrb[14].mxu1 }
 0x18e   : > { %720 = vst [vmem:[%s1389_s17 + $0x38] sm:$0xff] %v418_v12  ;;  %736 = vst [vmem:[%s1389_s17 + $0xb8] sm:$0xff] %v498_v13  ;;  %v420_v14 = vpop.f32.mrb[15].mxu0  ;;  %v500_v15 = vpop.f32.mrb[15].mxu1 }
 0x191   : > { %v423_v16 = vpop.f32.mrb[16].mxu0  ;;  %v503_v17 = vpop.f32.mrb[16].mxu1 }
 0x192   : > { %721 = vst [vmem:[%s1389_s17 + $0x40] sm:$0xff] %v423_v16  ;;  %737 = vst [vmem:[%s1389_s17 + $0xc0] sm:$0xff] %v503_v17  ;;  %v425_v18 = vpop.f32.mrb[17].mxu0  ;;  %v505_v19 = vpop.f32.mrb[17].mxu1 }
 0x195   : > { %v428_v20 = vpop.f32.mrb[18].mxu0  ;;  %v508_v21 = vpop.f32.mrb[18].mxu1 }
 0x196   : > { %722 = vst [vmem:[%s1389_s17 + $0x48] sm:$0xff] %v428_v20  ;;  %738 = vst [vmem:[%s1389_s17 + $0xc8] sm:$0xff] %v508_v21  ;;  %v430_v22 = vpop.f32.mrb[19].mxu0  ;;  %v510_v23 = vpop.f32.mrb[19].mxu1 }
 0x199   : > { %v433_v24 = vpop.f32.mrb[20].mxu0  ;;  %v513_v25 = vpop.f32.mrb[20].mxu1 }
 0x19a   : > { %723 = vst [vmem:[%s1389_s17 + $0x50] sm:$0xff] %v433_v24  ;;  %739 = vst [vmem:[%s1389_s17 + $0xd0] sm:$0xff] %v513_v25  ;;  %v435_v26 = vpop.f32.mrb[21].mxu0  ;;  %v515_v27 = vpop.f32.mrb[21].mxu1 }
 0x19d   : > { %v438_v28 = vpop.f32.mrb[22].mxu0  ;;  %v518_v29 = vpop.f32.mrb[22].mxu1 }
 0x19e   : > { %724 = vst [vmem:[%s1389_s17 + $0x58] sm:$0xff] %v438_v28  ;;  %740 = vst [vmem:[%s1389_s17 + $0xd8] sm:$0xff] %v518_v29  ;;  %v440_v30 = vpop.f32.mrb[23].mxu0  ;;  %v520_v31 = vpop.f32.mrb[23].mxu1 }
 0x1a1   : > { %v443_v32 = vpop.f32.mrb[24].mxu0  ;;  %v523_v33 = vpop.f32.mrb[24].mxu1 }
 0x1a2   : > { %725 = vst [vmem:[%s1389_s17 + $0x60] sm:$0xff] %v443_v32  ;;  %741 = vst [vmem:[%s1389_s17 + $0xe0] sm:$0xff] %v523_v33  ;;  %v445_v34 = vpop.f32.mrb[25].mxu0  ;;  %v525_v35 = vpop.f32.mrb[25].mxu1 }
 0x1a5   : > { %v448_v36 = vpop.f32.mrb[26].mxu0  ;;  %v528_v37 = vpop.f32.mrb[26].mxu1 }
 0x1a6   : > { %726 = vst [vmem:[%s1389_s17 + $0x68] sm:$0xff] %v448_v36  ;;  %742 = vst [vmem:[%s1389_s17 + $0xe8] sm:$0xff] %v528_v37  ;;  %v450_v38 = vpop.f32.mrb[27].mxu0  ;;  %v530_v39 = vpop.f32.mrb[27].mxu1 }
 0x1a9   : > { %v453_v40 = vpop.f32.mrb[28].mxu0  ;;  %v533_v41 = vpop.f32.mrb[28].mxu1 }
 0x1aa   : > { %727 = vst [vmem:[%s1389_s17 + $0x70] sm:$0xff] %v453_v40  ;;  %743 = vst [vmem:[%s1389_s17 + $0xf0] sm:$0xff] %v533_v41  ;;  %v455_v42 = vpop.f32.mrb[29].mxu0  ;;  %v535_v43 = vpop.f32.mrb[29].mxu1 }
 0x1ad   : > { %v458_v44 = vpop.f32.mrb[30].mxu0  ;;  %v538_v45 = vpop.f32.mrb[30].mxu1 }
 0x1ae   : > { %728 = vst [vmem:[%s1389_s17 + $0x78] sm:$0xff] %v458_v44  ;;  %744 = vst [vmem:[%s1389_s17 + $0xf8] sm:$0xff] %v538_v45  ;;  %v460_v46 = vpop.f32.mrb[31].mxu0  ;;  %v540_v47 = vpop.f32.mrb[31].mxu1 }
 0x1af   : > { %1083 = shalt.err (!%p1080_p5)
}
 0x1b0   : > { %s1084_s23 = scalar_lea.hbm %s1426_s5, 4096  ;;  %s1088_s26 = scalar_lea.hbm %s1481_s2, 8192 }
 0x1b1   : > { %p1085_p9 = scmp.ne.s32.totalorder %s1426_s5, %s1084_s23  ;;  %p1089_p3 = scmp.lt.u32.totalorder %s1426_s5, %s1481_s2 }
 0x1b2   : > { %p1090_p7 = scmp.lt.u32.totalorder %s1088_s26, %s1084_s23  ;;  %p1092_p4 = scmp.lt.u32.totalorder %s1084_s23, %s1426_s5 }
 0x1b3   : > { %p1086_p1 = pnand %p1085_p9, %p1280_p10 }
 0x1b4   : > { %p1091_p13 = por %p1090_p7, %p1089_p3 }
 0x1b5   : > { %p1087_p2 = pneg %p1086_p1 }
 0x1b6   : > { %p1093_p6 = por %p1092_p4, %p1091_p13 }
 0x1b8   : > { %p1094_p8 = pnand %p1093_p6, %p1087_p2 }
 0x1ba   : > { %1097 = shalt.err (!%p1094_p8)
}
 0x1bb   : > { %s1163_s6 = smov 128   ;;  %s1164_s17 = smov 256  }
 0x1bc   : > { %s1165_s19 = smov 8  }
 0x1bd   : > { %940 = dma.vmem_to_hbm [thread:$0]  (%p1280_p10), %s1428_s21, 4096, %s1426_s5, %s746_s12, %s1163_s6, %s1164_s17, %s1165_s19  }
 0x1be PF: > { %s776_s7 = sand.u32 1, %s1136_s9   ;;  %p1499_p12 = scmp.ne.s32.totalorder %s1489_s20, 0 }
 0x1bf   : > { %p1500_p11 = scmp.ge.s32.totalorder %s1156_s14, 2  ;;  %s777_s4 = scalar_lea.sflag [#allocation5], %s776_s7 }
 0x1c1   : > { %p951_p0 = pnand %p1500_p11, %p1499_p12 }
 0x1c3   : > { %1131 = dma.done.wait (!%p951_p0), %s777_s4, 4096  }
 0x1c4   : > { %1133 = vsyncadd (!%p951_p0), %s777_s4, 4294963200  ;;  %s19_s14 = sadd.s32 1, %s1156_s14   ;;  %s1501_s9 = smov %s1140_s10 }
 0x1c5   : > { %p16_p5 = scmp.ge.s32.totalorder %s19_s14, 4   ;;  %s1502_s10 = smov %s1144_s11 }
 0x1c6   : > { %s1503_s11 = smov %s1289_s28  ;;  %s1504_s12 = smov %s1152_s13 }
 0x1c7   : > { %s1505_s13 = smov %s1507_s25  ;;  %18 = sbr.rel (!%p16_p5) target bundleno = 7 (0x7), region = 91 }
 0x1ce   :  { %782 = vsyncpa [#allocation4], 1 }
 0x1cf   :  { %784 = vsyncpa [#allocation4 + $0x1], 1 }
 0x1d0   :  { %785 = vsyncpa [#allocation7], 1 }
 0x1d1   :  { %787 = vsyncpa [#allocation7 + $0x1], 1 }
 0x1d2   :  { %788 = vsyncpa [#allocation5], 1 }
 0x1d3   :  { %790 = vsyncpa [#allocation5 + $0x1], 1 }

</bundles_post_ra>
